<compile_context>
chip_gen: v6e
topology: v6e:2x2x1
jax: 0.10.0
libtpu: 0.0.40
codegen_flags: <defaults>
</compile_context>

<pallas_src>
import functools

import jax
import jax.numpy as jnp
from jax.experimental import pallas as pl
from jax.experimental.pallas import tpu as pltpu

EPS = 1e-5
_VMEM_LIMIT = 32 * 1024 * 1024   # explicit scoped-VMEM budget, safe on v5e/v6e/v7x
_LANE = 128
_ROW_ALIGN = 16                  # bf16 sublane packing (16, 128) tiles


def _round_up(x, m):
    return (x + m - 1) // m * m


# --------------------------------------------------------------------------- #
# Pass 1: Linear1 (bf16 MXU, f32 acc) -> BN1 statistics -> folded scale/shift. #
# --------------------------------------------------------------------------- #
def _stats1_kernel(x_ref, w_ref, g_ref, b_ref,
                   scale_ref, shift_ref,
                   s_acc, q_acc, *, n_rows):
    i = pl.program_id(0)

    @pl.when(i == 0)
    def _init():
        s_acc[...] = jnp.zeros_like(s_acc)
        q_acc[...] = jnp.zeros_like(q_acc)

    # Linear (bias dropped: it cancels exactly under batch-stats BatchNorm).
    y = jnp.dot(x_ref[...], w_ref[...], preferred_element_type=jnp.float32)

    # Zero-padded rows of x give y == 0 there (bias dropped), adding 0 to both
    # sums; dividing by the true n_rows keeps the statistics exact.
    s_acc[...] += jnp.sum(y, axis=0, keepdims=True)
    q_acc[...] += jnp.sum(y * y, axis=0, keepdims=True)

    @pl.when(i == pl.num_programs(0) - 1)
    def _finalize():
        inv_n = 1.0 / float(n_rows)
        mu = s_acc[...] * inv_n
        var = q_acc[...] * inv_n - mu * mu
        scale = g_ref[...] * jax.lax.rsqrt(var + EPS)
        scale_ref[...] = scale
        shift_ref[...] = b_ref[...] - mu * scale


# --------------------------------------------------------------------------- #
# Pass 2: recompute Linear1, apply BN1+ReLU (store a as bf16), Linear2 + BN2   #
# statistics -> folded scale/shift.                                            #
# --------------------------------------------------------------------------- #
def _bn_relu_linear_stats_kernel(x_ref, w1_ref, sc1_ref, sh1_ref,
                                 w2_ref, g_ref, b_ref,
                                 a_ref, scale_ref, shift_ref,
                                 s_acc, q_acc, *, n_rows, tile_rows, masked):
    i = pl.program_id(0)

    @pl.when(i == 0)
    def _init():
        s_acc[...] = jnp.zeros_like(s_acc)
        q_acc[...] = jnp.zeros_like(q_acc)

    # Recomputed y is bitwise identical to pass 1 (same bf16 inputs, same MXU op).
    y = jnp.dot(x_ref[...], w1_ref[...], preferred_element_type=jnp.float32)
    # BN1 applied as a single fused per-column multiply-add, then ReLU.
    a = jnp.maximum(y * sc1_ref[...] + sh1_ref[...], 0.0)
    if masked:
        # Zero out padded rows so they contribute nothing to BN2 statistics.
        row = jax.lax.broadcasted_iota(jnp.int32, a.shape, 0) + i * tile_rows
        a = jnp.where(row < n_rows, a, 0.0)

    # Store exactly what the second MXU matmul consumes -> lossless recompute
    # of z in pass 3, at half the HBM bytes of an f32 intermediate.
    a_bf = a.astype(jnp.bfloat16)
    a_ref[...] = a_bf

    z = jnp.dot(a_bf, w2_ref[...], preferred_element_type=jnp.float32)
    s_acc[...] += jnp.sum(z, axis=0, keepdims=True)
    q_acc[...] += jnp.sum(z * z, axis=0, keepdims=True)

    @pl.when(i == pl.num_programs(0) - 1)
    def _finalize():
        inv_n = 1.0 / float(n_rows)
        mu = s_acc[...] * inv_n
        var = q_acc[...] * inv_n - mu * mu
        scale = g_ref[...] * jax.lax.rsqrt(var + EPS)
        scale_ref[...] = scale
        shift_ref[...] = b_ref[...] - mu * scale


# --------------------------------------------------------------------------- #
# Pass 3: recompute Linear2, apply BN2 + ReLU (parallel over row tiles).       #
# --------------------------------------------------------------------------- #
def _linear_bn_relu_kernel(a_ref, w2_ref, sc2_ref, sh2_ref, o_ref):
    z = jnp.dot(a_ref[...], w2_ref[...], preferred_element_type=jnp.float32)
    o_ref[...] = jnp.maximum(z * sc2_ref[...] + sh2_ref[...], 0.0)


# --------------------------------------------------------------------------- #
# Wrapper.                                                                     #
# --------------------------------------------------------------------------- #
def apply_node_func(h, params, *, tile_rows=512):
    """h: [N, input_dim] float32 node features. Returns [N, output_dim] float32.

    tile_rows=512 keeps every (tile, D<=1024) buffer at <=2 MiB, well inside
    the 32 MiB scoped-VMEM budget with double buffering (v7x-safe).
    """
    n, d_in = h.shape
    h_dim = params["w1"].shape[1]
    d_out = params["w2"].shape[1]

    # Lane-dense feature dims (multiples of 128).
    d_in_p = _round_up(d_in, _LANE)
    h_dim_p = _round_up(h_dim, _LANE)
    d_out_p = _round_up(d_out, _LANE)

    # Row tiling (multiple of 16 for bf16 sublane packing); pad N to whole tiles.
    tile_rows = _round_up(max(tile_rows, _ROW_ALIGN), _ROW_ALIGN)
    tn = min(tile_rows, _round_up(n, _ROW_ALIGN))
    n_p = _round_up(n, tn)
    num_tiles = n_p // tn
    masked = n_p != n

    f32 = jnp.float32
    bf16 = jnp.bfloat16

    # Pre-cast x to bf16 (MXU input dtype) -> half the HBM read, no precision loss
    # relative to casting inside the kernel.
    x_pad = jnp.pad(h.astype(bf16), ((0, n_p - n), (0, d_in_p - d_in)))
    w1_p = jnp.pad(params["w1"].astype(f32),
                   ((0, d_in_p - d_in), (0, h_dim_p - h_dim))).astype(bf16)
    w2_p = jnp.pad(params["w2"].astype(f32),
                   ((0, h_dim_p - h_dim), (0, d_out_p - d_out))).astype(bf16)
    g1 = jnp.pad(params["gamma1"].astype(f32).reshape(1, -1),
                 ((0, 0), (0, h_dim_p - h_dim)))
    be1 = jnp.pad(params["beta1"].astype(f32).reshape(1, -1),
                  ((0, 0), (0, h_dim_p - h_dim)))
    g2 = jnp.pad(params["gamma2"].astype(f32).reshape(1, -1),
                 ((0, 0), (0, d_out_p - d_out)))
    be2 = jnp.pad(params["beta2"].astype(f32).reshape(1, -1),
                  ((0, 0), (0, d_out_p - d_out)))
    # NOTE: params["b1"] / params["b2"] are mathematically dead under training-mode
    # BatchNorm (bias cancels in y - mean(y)) and are deliberately not DMA'd.

    cp_arb = pltpu.CompilerParams(dimension_semantics=("arbitrary",),
                                  vmem_limit_bytes=_VMEM_LIMIT)
    cp_par = pltpu.CompilerParams(dimension_semantics=("parallel",),
                                  vmem_limit_bytes=_VMEM_LIMIT)

    # ---- Pass 1: Linear1 + BN1 stats -> (scale1, shift1); no large HBM writes ----
    sc1, sh1 = pl.pallas_call(
        functools.partial(_stats1_kernel, n_rows=n),
        grid=(num_tiles,),
        in_specs=[
            pl.BlockSpec((tn, d_in_p), lambda i: (i, 0)),
            pl.BlockSpec((d_in_p, h_dim_p), lambda i: (0, 0)),   # resident weight
            pl.BlockSpec((1, h_dim_p), lambda i: (0, 0)),
            pl.BlockSpec((1, h_dim_p), lambda i: (0, 0)),
        ],
        out_specs=[
            pl.BlockSpec((1, h_dim_p), lambda i: (0, 0)),
            pl.BlockSpec((1, h_dim_p), lambda i: (0, 0)),
        ],
        out_shape=[
            jax.ShapeDtypeStruct((1, h_dim_p), f32),
            jax.ShapeDtypeStruct((1, h_dim_p), f32),
        ],
        scratch_shapes=[pltpu.VMEM((1, h_dim_p), f32),
                        pltpu.VMEM((1, h_dim_p), f32)],
        compiler_params=cp_arb,
        cost_estimate=pl.CostEstimate(
            flops=int(2 * n_p * d_in_p * h_dim_p + 3 * n_p * h_dim_p),
            transcendentals=int(h_dim_p),
            bytes_accessed=int(2 * n_p * d_in_p + 2 * d_in_p * h_dim_p
                               + 16 * h_dim_p)),
    )(x_pad, w1_p, g1, be1)

    # ---- Pass 2: recompute Linear1, BN1+ReLU (store bf16 a), Linear2 + BN2 stats ----
    a, sc2, sh2 = pl.pallas_call(
        functools.partial(_bn_relu_linear_stats_kernel,
                          n_rows=n, tile_rows=tn, masked=masked),
        grid=(num_tiles,),
        in_specs=[
            pl.BlockSpec((tn, d_in_p), lambda i: (i, 0)),
            pl.BlockSpec((d_in_p, h_dim_p), lambda i: (0, 0)),   # resident weight
            pl.BlockSpec((1, h_dim_p), lambda i: (0, 0)),
            pl.BlockSpec((1, h_dim_p), lambda i: (0, 0)),
            pl.BlockSpec((h_dim_p, d_out_p), lambda i: (0, 0)),  # resident weight
            pl.BlockSpec((1, d_out_p), lambda i: (0, 0)),
            pl.BlockSpec((1, d_out_p), lambda i: (0, 0)),
        ],
        out_specs=[
            pl.BlockSpec((tn, h_dim_p), lambda i: (i, 0)),
            pl.BlockSpec((1, d_out_p), lambda i: (0, 0)),
            pl.BlockSpec((1, d_out_p), lambda i: (0, 0)),
        ],
        out_shape=[
            jax.ShapeDtypeStruct((n_p, h_dim_p), bf16),
            jax.ShapeDtypeStruct((1, d_out_p), f32),
            jax.ShapeDtypeStruct((1, d_out_p), f32),
        ],
        scratch_shapes=[pltpu.VMEM((1, d_out_p), f32),
                        pltpu.VMEM((1, d_out_p), f32)],
        compiler_params=cp_arb,
        cost_estimate=pl.CostEstimate(
            flops=int(2 * n_p * d_in_p * h_dim_p
                      + 2 * n_p * h_dim_p * d_out_p
                      + 3 * n_p * h_dim_p + 3 * n_p * d_out_p),
            transcendentals=int(d_out_p),
            bytes_accessed=int(2 * n_p * d_in_p + 2 * n_p * h_dim_p
                               + 2 * d_in_p * h_dim_p + 2 * h_dim_p * d_out_p
                               + 16 * (h_dim_p + d_out_p))),
    )(x_pad, w1_p, sc1, sh1, w2_p, g2, be2)

    # ---- Pass 3: recompute Linear2 + BN2 apply + ReLU ----
    out_pad = pl.pallas_call(
        _linear_bn_relu_kernel,
        grid=(num_tiles,),
        in_specs=[
            pl.BlockSpec((tn, h_dim_p), lambda i: (i, 0)),
            pl.BlockSpec((h_dim_p, d_out_p), lambda i: (0, 0)),  # resident weight
            pl.BlockSpec((1, d_out_p), lambda i: (0, 0)),
            pl.BlockSpec((1, d_out_p), lambda i: (0, 0)),
        ],
        out_specs=pl.BlockSpec((tn, d_out_p), lambda i: (i, 0)),
        out_shape=jax.ShapeDtypeStruct((n_p, d_out_p), f32),
        compiler_params=cp_par,
        cost_estimate=pl.CostEstimate(
            flops=int(2 * n_p * h_dim_p * d_out_p + 3 * n_p * d_out_p),
            transcendentals=0,
            bytes_accessed=int(2 * n_p * h_dim_p + 4 * n_p * d_out_p
                               + 2 * h_dim_p * d_out_p)),
    )(a, w2_p, sc2, sh2)

    return out_pad[:n, :d_out]


# --------------------------------------------------------------------------- #
# Parameters and pure-JAX reference (PyTorch-equivalent forward).              #
# --------------------------------------------------------------------------- #
def init_params(key, input_dim, hidden_dim, output_dim):
    k1, k2, k3, k4, k5, k6, k7, k8 = jax.random.split(key, 8)
    # Linear weights stored as [in, out] (PyTorch weight.T).
    w1 = jax.random.normal(k1, (input_dim, hidden_dim), jnp.float32) / jnp.sqrt(input_dim)
    w2 = jax.random.normal(k2, (hidden_dim, output_dim), jnp.float32) / jnp.sqrt(hidden_dim)
    return {
        "w1": w1,
        "b1": 0.1 * jax.random.normal(k3, (hidden_dim,), jnp.float32),
        "gamma1": 1.0 + 0.1 * jax.random.normal(k5, (hidden_dim,), jnp.float32),
        "beta1": 0.1 * jax.random.normal(k6, (hidden_dim,), jnp.float32),
        "w2": w2,
        "b2": 0.1 * jax.random.normal(k4, (output_dim,), jnp.float32),
        "gamma2": 1.0 + 0.1 * jax.random.normal(k7, (output_dim,), jnp.float32),
        "beta2": 0.1 * jax.random.normal(k8, (output_dim,), jnp.float32),
    }


def reference(h, p):
    """PyTorch-equivalent forward (training-mode BN, biases included).

    Matmuls use bf16 inputs with f32 accumulation to mirror the kernel's MXU
    path; biases are kept here to verify they cancel exactly under batch-stats
    BatchNorm (the kernel drops them)."""
    bf16 = jnp.bfloat16
    y = jnp.dot(h.astype(bf16), p["w1"].astype(bf16),
                preferred_element_type=jnp.float32) + p["b1"]
    mu = y.mean(0, keepdims=True)
    var = ((y - mu) ** 2).mean(0, keepdims=True)          # biased variance
    y = p["gamma1"] * (y - mu) / jnp.sqrt(var + EPS) + p["beta1"]
    y = jnp.maximum(y, 0.0)
    z = jnp.dot(y.astype(bf16), p["w2"].astype(bf16),
                preferred_element_type=jnp.float32) + p["b2"]
    mu2 = z.mean(0, keepdims=True)
    var2 = ((z - mu2) ** 2).mean(0, keepdims=True)
    z = p["gamma2"] * (z - mu2) / jnp.sqrt(var2 + EPS) + p["beta2"]
    return jnp.maximum(z, 0.0)


if __name__ == "__main__":
    key = jax.random.PRNGKey(0)
    k_h, k_p = jax.random.split(key)

    # Small, deliberately "ragged" sizes: exercises row tiling (4 tiles of 64),
    # padded-row masking (200 -> 256) and lane padding (48/64/32 -> 128).
    N, INPUT_DIM, HIDDEN_DIM, OUTPUT_DIM = 200, 48, 64, 32
    h = jax.random.normal(k_h, (N, INPUT_DIM), jnp.float32)
    params = init_params(k_p, INPUT_DIM, HIDDEN_DIM, OUTPUT_DIM)

    out = apply_node_func(h, params, tile_rows=64)
    out = jax.block_until_ready(out)

    ref = reference(h, params)
    assert out.shape == (N, OUTPUT_DIM)
    max_err = jnp.max(jnp.abs(out - ref))
    # Tolerance at bf16-matmul noise level (values are O(1) after BatchNorm).
    assert jnp.allclose(out, ref, atol=5e-3, rtol=5e-3), \
        f"mismatch vs reference (max abs err {max_err})"

    print("KERNEL_OK")
</pallas_src>

<mosaic_0001>
module attributes {stable_mosaic.version = 11 : i64} {
  func.func @_stats1_kernel(%arg0: i32, %arg1: memref<64x128xbf16, #tpu.memory_space<vmem>>, %arg2: memref<128x128xbf16, #tpu.memory_space<vmem>>, %arg3: memref<1x128xf32, #tpu.memory_space<vmem>>, %arg4: memref<1x128xf32, #tpu.memory_space<vmem>>, %arg5: memref<1x128xf32, #tpu.memory_space<vmem>>, %arg6: memref<1x128xf32, #tpu.memory_space<vmem>>, %arg7: memref<1x128xf32, #tpu.memory_space<vmem>>, %arg8: memref<1x128xf32, #tpu.memory_space<vmem>>) attributes {dimension_semantics = [#tpu.dimension_semantics<arbitrary>], iteration_bounds = array<i64: 4>, scalar_prefetch = 0 : i64, scratch_operands = 2 : i64, tpu.core_type = #tpu.core_type<tc>, window_params = [{transform_indices = @transform_0, window_bounds = array<i64: 64, 128>}, {pipeline_mode = #tpu.pipeline_mode<synchronous>, transform_indices = @transform_1, window_bounds = array<i64: 128, 128>}, {pipeline_mode = #tpu.pipeline_mode<synchronous>, transform_indices = @transform_2, window_bounds = array<i64: 1, 128>}, {pipeline_mode = #tpu.pipeline_mode<synchronous>, transform_indices = @transform_3, window_bounds = array<i64: 1, 128>}, {pipeline_mode = #tpu.pipeline_mode<synchronous>, transform_indices = @transform_4, window_bounds = array<i64: 1, 128>}, {pipeline_mode = #tpu.pipeline_mode<synchronous>, transform_indices = @transform_5, window_bounds = array<i64: 1, 128>}]} {
    %c0_i32 = arith.constant 0 : i32
    %0 = arith.cmpi eq, %arg0, %c0_i32 : i32
    %1 = arith.extui %0 : i1 to i32
    %c0_i32_0 = arith.constant 0 : i32
    %2 = arith.cmpi ne, %1, %c0_i32_0 : i32
    scf.if %2 {
      %cst_15 = arith.constant 0.000000e+00 : f32
      %20 = vector.broadcast %cst_15 : f32 to vector<1x128xf32>
      %c0_16 = arith.constant 0 : index
      %c0_17 = arith.constant 0 : index
      %21 = vector.load %arg7[%c0_16, %c0_17] : memref<1x128xf32, #tpu.memory_space<vmem>>, vector<1x128xf32>
      tpu.vector_store %arg7[%c0_16, %c0_17], %20 {strides = array<i32>} : memref<1x128xf32, #tpu.memory_space<vmem>>, vector<1x128xf32>,
      %cst_18 = arith.constant 0.000000e+00 : f32
      %22 = vector.broadcast %cst_18 : f32 to vector<1x128xf32>
      %c0_19 = arith.constant 0 : index
      %c0_20 = arith.constant 0 : index
      %23 = vector.load %arg8[%c0_19, %c0_20] : memref<1x128xf32, #tpu.memory_space<vmem>>, vector<1x128xf32>
      tpu.vector_store %arg8[%c0_19, %c0_20], %22 {strides = array<i32>} : memref<1x128xf32, #tpu.memory_space<vmem>>, vector<1x128xf32>,
    } else {
    }
    %c0 = arith.constant 0 : index
    %c0_1 = arith.constant 0 : index
    %3 = vector.load %arg1[%c0, %c0_1] : memref<64x128xbf16, #tpu.memory_space<vmem>>, vector<64x128xbf16>
    %c0_2 = arith.constant 0 : index
    %c0_3 = arith.constant 0 : index
    %4 = vector.load %arg2[%c0_2, %c0_3] : memref<128x128xbf16, #tpu.memory_space<vmem>>, vector<128x128xbf16>
    %cst = arith.constant dense<0.000000e+00> : vector<64x128xf32>
    %5 = tpu.matmul %3, %4, %cst {dimension_numbers = #tpu.dot_dimension_numbers<[1], [0], [0], [1], [0, 0, 1, 1], [], []>} : vector<64x128xbf16>, vector<128x128xbf16>, vector<64x128xf32> -> vector<64x128xf32>
    %c0_4 = arith.constant 0 : index
    %c0_5 = arith.constant 0 : index
    %6 = vector.load %arg7[%c0_4, %c0_5] : memref<1x128xf32, #tpu.memory_space<vmem>>, vector<1x128xf32>
    %cst_6 = arith.constant dense<0.000000e+00> : vector<128xf32>
    %7 = vector.multi_reduction <add>, %5, %cst_6 [0] : vector<64x128xf32> to vector<128xf32>
    %8 = vector.shape_cast %7 : vector<128xf32> to vector<1x128xf32>
    %9 = arith.addf %6, %8 : vector<1x128xf32>
    %c0_7 = arith.constant 0 : index
    %c0_8 = arith.constant 0 : index
    %10 = vector.load %arg7[%c0_7, %c0_8] : memref<1x128xf32, #tpu.memory_space<vmem>>, vector<1x128xf32>
    tpu.vector_store %arg7[%c0_7, %c0_8], %9 {strides = array<i32>} : memref<1x128xf32, #tpu.memory_space<vmem>>, vector<1x128xf32>,
    %c0_9 = arith.constant 0 : index
    %c0_10 = arith.constant 0 : index
    %11 = vector.load %arg8[%c0_9, %c0_10] : memref<1x128xf32, #tpu.memory_space<vmem>>, vector<1x128xf32>
    %12 = arith.mulf %5, %5 : vector<64x128xf32>
    %cst_11 = arith.constant dense<0.000000e+00> : vector<128xf32>
    %13 = vector.multi_reduction <add>, %12, %cst_11 [0] : vector<64x128xf32> to vector<128xf32>
    %14 = vector.shape_cast %13 : vector<128xf32> to vector<1x128xf32>
    %15 = arith.addf %11, %14 : vector<1x128xf32>
    %c0_12 = arith.constant 0 : index
    %c0_13 = arith.constant 0 : index
    %16 = vector.load %arg8[%c0_12, %c0_13] : memref<1x128xf32, #tpu.memory_space<vmem>>, vector<1x128xf32>
    tpu.vector_store %arg8[%c0_12, %c0_13], %15 {strides = array<i32>} : memref<1x128xf32, #tpu.memory_space<vmem>>, vector<1x128xf32>,
    %c3_i32 = arith.constant 3 : i32
    %17 = arith.cmpi eq, %arg0, %c3_i32 : i32
    %18 = arith.extui %17 : i1 to i32
    %c0_i32_14 = arith.constant 0 : i32
    %19 = arith.cmpi ne, %18, %c0_i32_14 : i32
    scf.if %19 {
      %c0_15 = arith.constant 0 : index
      %c0_16 = arith.constant 0 : index
      %20 = vector.load %arg7[%c0_15, %c0_16] : memref<1x128xf32, #tpu.memory_space<vmem>>, vector<1x128xf32>
      %cst_17 = arith.constant 5.000000e-03 : f32
      %21 = vector.broadcast %cst_17 : f32 to vector<1x128xf32>
      %22 = arith.mulf %20, %21 : vector<1x128xf32>
      %c0_18 = arith.constant 0 : index
      %c0_19 = arith.constant 0 : index
      %23 = vector.load %arg8[%c0_18, %c0_19] : memref<1x128xf32, #tpu.memory_space<vmem>>, vector<1x128xf32>
      %cst_20 = arith.constant 5.000000e-03 : f32
      %24 = vector.broadcast %cst_20 : f32 to vector<1x128xf32>
      %25 = arith.mulf %23, %24 : vector<1x128xf32>
      %26 = arith.mulf %22, %22 : vector<1x128xf32>
      %27 = arith.subf %25, %26 : vector<1x128xf32>
      %c0_21 = arith.constant 0 : index
      %c0_22 = arith.constant 0 : index
      %28 = vector.load %arg3[%c0_21, %c0_22] : memref<1x128xf32, #tpu.memory_space<vmem>>, vector<1x128xf32>
      %cst_23 = arith.constant 9.99999974E-6 : f32
      %29 = vector.broadcast %cst_23 : f32 to vector<1x128xf32>
      %30 = arith.addf %27, %29 : vector<1x128xf32>
      %31 = math.rsqrt %30 : vector<1x128xf32>
      %32 = arith.mulf %28, %31 : vector<1x128xf32>
      %c0_24 = arith.constant 0 : index
      %c0_25 = arith.constant 0 : index
      %33 = vector.load %arg5[%c0_24, %c0_25] : memref<1x128xf32, #tpu.memory_space<vmem>>, vector<1x128xf32>
      tpu.vector_store %arg5[%c0_24, %c0_25], %32 {strides = array<i32>} : memref<1x128xf32, #tpu.memory_space<vmem>>, vector<1x128xf32>,
      %c0_26 = arith.constant 0 : index
      %c0_27 = arith.constant 0 : index
      %34 = vector.load %arg4[%c0_26, %c0_27] : memref<1x128xf32, #tpu.memory_space<vmem>>, vector<1x128xf32>
      %35 = arith.mulf %22, %32 : vector<1x128xf32>
      %36 = arith.subf %34, %35 : vector<1x128xf32>
      %c0_28 = arith.constant 0 : index
      %c0_29 = arith.constant 0 : index
      %37 = vector.load %arg6[%c0_28, %c0_29] : memref<1x128xf32, #tpu.memory_space<vmem>>, vector<1x128xf32>
      tpu.vector_store %arg6[%c0_28, %c0_29], %36 {strides = array<i32>} : memref<1x128xf32, #tpu.memory_space<vmem>>, vector<1x128xf32>,
    } else {
    }
    return
  }
  func.func @transform_0(%arg0: i32) -> (i32, i32) {
    %c0_i32 = arith.constant 0 : i32
    %c0_i32_0 = arith.constant 0 : i32
    return %arg0, %c0_i32 : i32, i32
  }
  func.func @transform_1(%arg0: i32) -> (i32, i32) {
    %c0_i32 = arith.constant 0 : i32
    %c0_i32_0 = arith.constant 0 : i32
    %c0_i32_1 = arith.constant 0 : i32
    return %c0_i32, %c0_i32_0 : i32, i32
  }
  func.func @transform_2(%arg0: i32) -> (i32, i32) {
    %c0_i32 = arith.constant 0 : i32
    %c0_i32_0 = arith.constant 0 : i32
    %c0_i32_1 = arith.constant 0 : i32
    return %c0_i32, %c0_i32_0 : i32, i32
  }
  func.func @transform_3(%arg0: i32) -> (i32, i32) {
    %c0_i32 = arith.constant 0 : i32
    %c0_i32_0 = arith.constant 0 : i32
    %c0_i32_1 = arith.constant 0 : i32
    return %c0_i32, %c0_i32_0 : i32, i32
  }
  func.func @transform_4(%arg0: i32) -> (i32, i32) {
    %c0_i32 = arith.constant 0 : i32
    %c0_i32_0 = arith.constant 0 : i32
    %c0_i32_1 = arith.constant 0 : i32
    return %c0_i32, %c0_i32_0 : i32, i32
  }
  func.func @transform_5(%arg0: i32) -> (i32, i32) {
    %c0_i32 = arith.constant 0 : i32
    %c0_i32_0 = arith.constant 0 : i32
    %c0_i32_1 = arith.constant 0 : i32
    return %c0_i32, %c0_i32_0 : i32, i32
  }
}

</mosaic_0001>

<bundles_post_ra>
// kernel: tpu_custom_call.1
= control target key start
LH: loop header
LB: loop body
LE: loop exit
PB: predicated region body
PF: predicated region fallthrough
CT: control target
= control target key end

     0   :  { %11 = vsyncpa [#allocation5], 0  ;;  %s1079_s0 = inlined_call_operand.hbm [shape: bf16[256,128], index: 0, kind: input, shape index: {}]   ;;  %s1080_s1 = inlined_call_operand.hbm [shape: bf16[128,128], index: 1, kind: input, shape index: {}]   ;;  %s1081_s2 = inlined_call_operand.vmem [shape: f32[1,128], index: 2, kind: input, shape index: {}]   ;;  %s1082_s3 = inlined_call_operand.vmem [shape: f32[1,128], index: 3, kind: input, shape index: {}]   ;;  %s1083_s4 = inlined_call_operand.hbm [shape: f32[1,128], index: 4, kind: output, shape index: {0}]   ;;  %s1084_s5 = inlined_call_operand.hbm [shape: f32[1,128], index: 5, kind: output, shape index: {1}]  }
   0x1   :  { %13 = vsyncpa [#allocation5 + $0x1], 0 }
   0x2   :  { %14 = vsyncpa [#allocation8], 0 }
   0x3   :  { %15 = vsyncpa [#allocation6], 0 }
   0x4   :  { %16 = vsyncpa [#allocation11], 0  ;;  %s913_s18 = smov 0   ;;  %s915_s19 = smov 0  }
   0x5   :  { %s917_s20 = smov 0   ;;  %s919_s21 = smov 0  }
   0x6 LB: > { %s932_s22 = sadd.s32 4294967295, %s874_s21   ;;  %p42_p0 = scmp.ne.s32.totalorder %s866_s19, %s862_s18  ;;  %s874_s21 = sphi %s919_s21, %s1100_s21   ;;  %s870_s20 = sphi %s917_s20, %s1099_s20   ;;  %s866_s19 = sphi %s915_s19, %s1098_s19   ;;  %s862_s18 = sphi %s913_s18, %s1097_s18  }
   0x7   : > { %p1085_p1 = scmp.eq.s32.totalorder %s932_s22, 0  ;;  %p563_p2 = scmp.ge.s32.totalorder %s874_s21, 1 }
   0x8   : > { %p158_p3 = scmp.lt.s32.totalorder %s874_s21, 5  ;;  %s876_s25 = smov [#allocation7]  }
   0x9   : > { %p941_p5 = por %p1085_p1, %p42_p0  ;;  %s170_s26 = sshll.u32 %s876_s25, 4  ;;  %s171_s26 = int_to_ptr.vmem [resolvable:$true] %s170_s26 }
   0xa   : > { %p945_p6 = pnand %p563_p2, %p158_p3  ;;  %s958_s28 = sadd.s32 1, %s874_s21  }
   0xb   : > { %s1088_s23 = scalar_select %p941_p5, 1, 0 }
   0xc   : > { %s1089_s24 = scalar_select %p945_p6, 1, 0 }
   0xd   : > { %p659_p7 = pneg %p945_p6  ;;  %s29_s29 = sadd.s32 1, %s870_s20 }
   0xe   : > { %s26_s30 = ssub.s32 %s874_s21, %s958_s28  ;;  %s737_s6 = scalar_lea.vmem %s171_s26, 1024 }
   0xf   : > { %p953_p8 = pnand %p659_p7, %p1085_p1  ;;  %p738_p10 = scmp.ne.s32.totalorder %s171_s26, %s737_s6 }
  0x10   : > { %p745_p13 = scmp.lt.s32.totalorder %s171_s26, %s171_s26  ;;  %p746_p0 = scmp.lt.s32.totalorder %s737_s6, %s737_s6 }
  0x11   : > { %p728_p9 = pneg %p953_p8 }
  0x12   : > { %p747_p2 = por %p746_p0, %p745_p13 }
  0x13   : > { %p740_p11 = pnand %p738_p10, %p728_p9 }
  0x15   : > { %p741_p12 = pneg %p740_p11 }
  0x17   : > { %p748_p3 = pnand %p747_p2, %p741_p12 }
  0x19   : > { %751 = shalt.err (!%p748_p3)
}
  0x1a   : > { %s877_s7 = smov 64   ;;  %s878_s8 = smov 4  }
  0x1b   : > { %662 = dma.hbm_to_vmem [thread:$0]  (!%p953_p8), %s1080_s1, 1024, %s171_s26, [#allocation8], %s877_s7, %s877_s7, %s878_s8  }
  0x1c   : > { %p27_p7 = scmp.eq.s32.totalorder %s26_s30, 0  ;;  %p36_p9 = scmp.ne.s32.totalorder %s870_s20, %s866_s19 }
  0x1d   : > { %p37_p10 = scmp.eq.s32.totalorder %s874_s21, 0  ;;  %p668_p11 = scmp.lt.s32.totalorder %s874_s21, 4 }
  0x1e   : > { %s978_s11 = scalar_select %p27_p7, %s870_s20, %s29_s29  }
  0x1f   : > { %p38_p12 = por %p37_p10, %p36_p9  ;;  %s190_s12 = sand.u32 1, %s870_s20  }
  0x20   : > { %s566_s13 = sshll.u32 %s190_s12, 5  ;;  %s592_s14 = sshll.u32 %s874_s21, 9 }
  0x21   : > { %s985_s17 = scalar_lea.hbm %s1079_s0, %s592_s14  ;;  %s194_s18 = scalar_lea.vmem [#allocation4], %s566_s13 }
  0x22   : > { %s201_s25 = sshll.u32 %s194_s18, 4  ;;  %p989_p8 = pnand %p668_p11, %p38_p12  ;;  %s987_s25 = int_to_ptr.vmem [resolvable:$true] %s201_s25 }
  0x23   : > { %s993_s27 = scalar_lea.sflag [#allocation5], %s190_s12  ;;  %s752_s21 = scalar_lea.hbm %s985_s17, 512 }
  0x24   : > { %p753_p13 = scmp.ne.s32.totalorder %s985_s17, %s752_s21  ;;  %p754_p0 = pneg %p989_p8 }
  0x25   : > { %s757_s6 = scalar_lea.hbm %s1079_s0, 2048  ;;  %p758_p7 = scmp.lt.s32.totalorder %s985_s17, %s1079_s0 }
  0x26   : > { %p755_p2 = pnand %p754_p0, %p753_p13  ;;  %p759_p9 = scmp.lt.s32.totalorder %s757_s6, %s752_s21 }
  0x28   : > { %p756_p3 = pneg %p755_p2  ;;  %p760_p10 = por %p759_p9, %p758_p7 }
  0x2a   : > { %p761_p11 = pnand %p760_p10, %p756_p3 }
  0x2c   : > { %764 = shalt.err (!%p761_p11)
}
  0x2d   : > { %s765_s12 = scalar_lea.vmem %s987_s25, 512  ;;  %s879_s13 = smov [#allocation4]  }
  0x2e   : > { %p766_p12 = scmp.ne.s32.totalorder %s987_s25, %s765_s12  ;;  %s770_s14 = sshll.u32 %s879_s13, 4  ;;  %s771_s14 = int_to_ptr.vmem [resolvable:$false] %s770_s14 }
  0x2f   : > { %s772_s15 = scalar_lea.vmem %s771_s14, 1024  ;;  %p773_p2 = scmp.lt.s32.totalorder %s987_s25, %s771_s14 }
  0x30   : > { %p768_p4 = pnand %p766_p12, %p754_p0  ;;  %p774_p1 = scmp.lt.s32.totalorder %s772_s15, %s765_s12 }
  0x32   : > { %p769_p13 = pneg %p768_p4  ;;  %p775_p5 = por %p774_p1, %p773_p2 }
  0x34   : > { %p776_p6 = pnand %p775_p5, %p769_p13 }
  0x36   : > { %779 = shalt.err (!%p776_p6)
}
  0x37   : > { %666 = dma.hbm_to_vmem [thread:$0]  (!%p989_p8), %s985_s17, 512, %s987_s25, %s993_s27, %s877_s7, %s877_s7, %s878_s8  }
  0x38   : > { %p1092_p4 = scmp.ne.s32.totalorder %s1089_s24, 0 }
  0x39   : > { %s215_s16 = sand.u32 (!%p1092_p4), 1, %s866_s19   ;;  %p1093_p1 = scmp.ne.s32.totalorder (!%p1092_p4), %s1088_s23, 0 }
  0x3a   : > { %213 = sbr.rel (%p1092_p4) target bundleno = 401 (0x191), region = 36  ;;  %s570_s18 = sshll.u32 (!%p1092_p4), %s215_s16, 5 }
  0x3b   : > { %s216_s21 = scalar_lea.sflag (!%p1092_p4), [#allocation5], %s215_s16  ;;  %s1020_s29 = scalar_lea.vmem (!%p1092_p4), [#allocation4], %s570_s18 }
  0x3f   : > { %845 = dma.done.wait (%p1093_p1), %s216_s21, 512  }
  0x40   : > { %847 = vsyncadd (%p1093_p1), %s216_s21, 4294966784  ;;  %p1094_p5 = scmp.eq.s32.totalorder %s932_s22, 0 }
  0x42   : > { %849 = dma.done.wait (%p1094_p5), [#allocation8], 1024   ;;  %p1095_p6 = pmov %p1094_p5 }
  0x43   : > { %p1096_p8 = scmp.ne.s32.totalorder %s932_s22, 0 }
  0x44   : > { %851 = vsyncadd (%p1095_p6), [#allocation8], 4294966272 }
  0x45   : > { %250 = sbr.rel (%p1096_p8) target bundleno = 76 (0x4c), region = 48 }
  0x4a   : > { %v880_v0 = vmov 0.0  }
  0x4b   : > { %251 = vst [vmem:[#allocation2] sm:$0x1] %v880_v0  ;;  %252 = vst [vmem:[#allocation3] sm:$0x1] %v880_v0 }
  0x4c PF: > { %v712_v1 = vld [vmem:[#allocation7 + $0x38] sm:$0xff]   ;;  %v713_v2 = vld [vmem:[#allocation7 + $0x30] sm:$0xff]   ;;  %v714_v3 = vld [vmem:[#allocation7 + $0x28] sm:$0xff]   ;;  %p585_p0 = scmp.ne.s32.totalorder %s932_s22, 3 }
  0x4d   : > { %605 = vmatprep.subr.bf16.mxu0 %v712_v1  ;;  %629 = vmatprep.subr.bf16.mxu1 %v712_v1  ;;  %v715_v4 = vld [vmem:[#allocation7 + $0x20] sm:$0xff]   ;;  %v722_v6 = vld [vmem:[%s1020_s29 + $0x10] sm:$0xff]   ;;  %v716_v7 = vld [vmem:[#allocation7 + $0x18] sm:$0xff]  }
  0x4e   : > { %606 = vmatpush3.bf16.msra.mxu0 %v712_v1  ;;  %637 = vmatpush3.bf16.msra.mxu1 %v712_v1  ;;  %v720_v5 = vld [vmem:[%s1020_s29] sm:$0xff]   ;;  %v717_v8 = vld [vmem:[#allocation7 + $0x10] sm:$0xff]   ;;  %v718_v9 = vld [vmem:[#allocation7 + $0x8] sm:$0xff]  }
  0x4f   : > { %607 = vmatprep.subr.bf16.mxu0 %v713_v2  ;;  %630 = vmatprep.subr.bf16.mxu1 %v713_v2  ;;  %v719_v10 = vld [vmem:[#allocation7] sm:$0xff]   ;;  %v721_v11 = vld [vmem:[%s1020_s29 + $0x8] sm:$0xff]   ;;  %v723_v12 = vld [vmem:[%s1020_s29 + $0x18] sm:$0xff]  }
  0x50   : > { %621 = vmatprep.mubr.bf16.mxu0 %v720_v5  ;;  %625 = vmatprep.mubr.bf16.mxu1 %v722_v6 }
  0x52   : > { %608 = vmatpush3.bf16.msra.mxu0 %v713_v2  ;;  %638 = vmatpush3.bf16.msra.mxu1 %v713_v2  ;;  %v414_v52 = vld [vmem:[#allocation2] sm:$0x1]  ;;  %v430_v55 = vld [vmem:[#allocation3] sm:$0x1] }
  0x53   : > { %609 = vmatprep.subr.bf16.mxu0 %v714_v3  ;;  %631 = vmatprep.subr.bf16.mxu1 %v714_v3 }
  0x56   : > { %610 = vmatpush3.bf16.msra.mxu0 %v714_v3  ;;  %639 = vmatpush3.bf16.msra.mxu1 %v714_v3 }
  0x57   : > { %611 = vmatprep.subr.bf16.mxu0 %v715_v4  ;;  %632 = vmatprep.subr.bf16.mxu1 %v715_v4 }
  0x5a   : > { %612 = vmatpush3.bf16.msra.mxu0 %v715_v4  ;;  %640 = vmatpush3.bf16.msra.mxu1 %v715_v4 }
  0x5b   : > { %613 = vmatprep.subr.bf16.mxu0 %v716_v7  ;;  %633 = vmatprep.subr.bf16.mxu1 %v716_v7 }
  0x5e   : > { %614 = vmatpush3.bf16.msra.mxu0 %v716_v7  ;;  %641 = vmatpush3.bf16.msra.mxu1 %v716_v7 }
  0x5f   : > { %615 = vmatprep.subr.bf16.mxu0 %v717_v8  ;;  %634 = vmatprep.subr.bf16.mxu1 %v717_v8 }
  0x62   : > { %616 = vmatpush3.bf16.msra.mxu0 %v717_v8  ;;  %642 = vmatpush3.bf16.msra.mxu1 %v717_v8 }
  0x63   : > { %617 = vmatprep.subr.bf16.mxu0 %v718_v9  ;;  %635 = vmatprep.subr.bf16.mxu1 %v718_v9 }
  0x66   : > { %618 = vmatpush3.bf16.msra.mxu0 %v718_v9  ;;  %643 = vmatpush3.bf16.msra.mxu1 %v718_v9 }
  0x67   : > { %619 = vmatprep.subr.bf16.mxu0 %v719_v10  ;;  %636 = vmatprep.subr.bf16.mxu1 %v719_v10 }
  0x6a   : > { %620 = vmatpush3.bf16.msra.mxu0 %v719_v10  ;;  %644 = vmatpush3.bf16.msra.mxu1 %v719_v10 }
  0x6d   : > { %622 = vmatmul.mubr.bf16.vlgmr.msra.gmra.mxu0 %v721_v11  ;;  %626 = vmatmul.mubr.bf16.vlgmr.msra.gmra.mxu1 %v723_v12 }
 0x12d   : > { %v623_v13 = vpop.f32.mrf.mxu0  ;;  %v627_v14 = vpop.f32.mrf.mxu1 }
 0x12e   : > { %v433_v23 = vmul.f32 %v623_v13, %v623_v13  ;;  %v437_v36 = vmul.f32 %v627_v14, %v627_v14 }
 0x12f   : > { %v383_v15 = vpop.f32.mrf.mxu0  ;;  %v399_v17 = vpop.f32.mrf.mxu1 }
 0x130   : > { %v431_v19 = vmul.f32 %v383_v15, %v383_v15  ;;  %v435_v30 = vmul.f32 %v399_v17, %v399_v17 }
 0x131   : > { %v624_v16 = vpop.f32.mrf.mxu0  ;;  %v628_v22 = vpop.f32.mrf.mxu1 }
 0x132   : > { %v434_v26 = vmul.f32 %v624_v16, %v624_v16  ;;  %v438_v39 = vmul.f32 %v628_v22, %v628_v22 }
 0x133   : > { %v386_v18 = vpop.f32.mrf.mxu0  ;;  %v402_v29 = vpop.f32.mrf.mxu1 }
 0x134   : > { %v415_v20 = vadd.f32 %v386_v18, %v383_v15  ;;  %v432_v21 = vmul.f32 %v386_v18, %v386_v18  ;;  %v436_v34 = vmul.f32 %v402_v29, %v402_v29 }
 0x136   : > { %v416_v24 = vadd.f32 %v623_v13, %v415_v20  ;;  %v439_v25 = vadd.f32 %v432_v21, %v431_v19 }
 0x138   : > { %v440_v27 = vadd.f32 %v439_v25, %v433_v23  ;;  %v417_v28 = vadd.f32 %v624_v16, %v416_v24 }
 0x13a   : > { %v418_v31 = vadd.f32 %v417_v28, %v399_v17  ;;  %v441_v32 = vadd.f32 %v440_v27, %v434_v26 }
 0x13c   : > { %v419_v33 = vadd.f32 %v418_v31, %v402_v29  ;;  %v442_v35 = vadd.f32 %v441_v32, %v435_v30 }
 0x13e   : > { %v420_v37 = vadd.f32 %v627_v14, %v419_v33  ;;  %v443_v38 = vadd.f32 %v442_v35, %v436_v34 }
 0x140   : > { %v421_v40 = vadd.f32 %v628_v22, %v420_v37  ;;  %v444_v41 = vadd.f32 %v443_v38, %v437_v36 }
 0x142   : > { %v422_v42 = vrot.slane %v421_v40, 4  ;;  %v445_v43 = vadd.f32 %v444_v41, %v438_v39 }
 0x144   : > { %v423_v44 = vadd.f32 %v422_v42, %v421_v40  ;;  %v446_v45 = vrot.slane %v445_v43, 4 }
 0x146   : > { %v424_v46 = vrot.slane %v423_v44, 2  ;;  %v447_v47 = vadd.f32 %v446_v45, %v445_v43 }
 0x148   : > { %v425_v48 = vadd.f32 %v424_v46, %v423_v44  ;;  %v448_v49 = vrot.slane %v447_v47, 2 }
 0x14a   : > { %v426_v50 = vrot.slane %v425_v48, 1  ;;  %v449_v51 = vadd.f32 %v448_v49, %v447_v47 }
 0x14c   : > { %v427_v53 = vadd.f32 %v426_v50, %v425_v48  ;;  %v450_v54 = vrot.slane %v449_v51, 1 }
 0x14e   : > { %v428_v56 = vadd.f32 %v427_v53, %v414_v52  ;;  %v451_v57 = vadd.f32 %v450_v54, %v449_v51  ;;  %457 = sbr.rel (%p585_p0) target bundleno = 373 (0x175), region = 52 }
 0x150   : > { %429 = vst [vmem:[#allocation2] sm:$0x1] %v428_v56  ;;  %v452_v58 = vadd.f32 %v451_v57, %v430_v55 }
 0x152   : > { %453 = vst [vmem:[#allocation3] sm:$0x1] %v452_v58 }
 0x153   : > { %v464_v2 = vld [vmem:[%s1081_s2] sm:$0x1] }
 0x154   : > { %v469_v5 = vld [vmem:[%s1082_s3] sm:$0x1] }
 0x157   : > { %v458_v59 = vld [vmem:[#allocation2] sm:$0x1] }
 0x158   : > { %v459_v61 = vmul.f32 0.005, %v458_v59 }
 0x159   : > { %v460_v60 = vld [vmem:[#allocation3] sm:$0x1] }
 0x15a   : > { %v461_v62 = vmul.f32 0.005, %v460_v60  ;;  %v462_v63 = vmul.f32 %v459_v61, %v459_v61 }
 0x15c   : > { %v463_v0 = vsub.f32 %v461_v62, %v462_v63 }
 0x15e   : > { %v465_v1 = vadd.f32 1e-05, %v463_v0 }
 0x160   : > { %724 = vrsqrt.f32 %v465_v1 }
 0x16d   : > { %v725_v3 = vpop.eup %724 }
 0x16e   : > { %v467_v4 = vmul.f32 %v725_v3, %v464_v2 }
 0x170   : > { %468 = vst [vmem:[#allocation9] sm:$0x1] %v467_v4  ;;  %v470_v6 = vmul.f32 %v467_v4, %v459_v61 }
 0x172   : > { %v471_v7 = vsub.f32 %v469_v5, %v470_v6 }
 0x174   : > { %472 = vst [vmem:[#allocation10] sm:$0x1] %v471_v7 }
 0x175 PF: > { %p670_p3 = scmp.eq.s32.totalorder %s932_s22, 3  ;;  %s881_s17 = smov [#allocation9]  }
 0x176   : > { %s480_s25 = sshll.u32 %s881_s17, 4  ;;  %s882_s26 = smov [#allocation10]   ;;  %s481_s25 = int_to_ptr.vmem [resolvable:$true] %s480_s25 }
 0x177   : > { %s491_s27 = sshll.u32 %s882_s26, 4  ;;  %s780_s30 = scalar_lea.vmem %s481_s25, 16  ;;  %s492_s27 = int_to_ptr.vmem [resolvable:$true] %s491_s27 }
 0x178   : > { %p781_p7 = scmp.ne.s32.totalorder %s481_s25, %s780_s30  ;;  %s786_s6 = scalar_lea.vmem %s481_s25, 32 }
 0x179   : > { %p787_p11 = scmp.lt.s32.totalorder %s481_s25, %s481_s25  ;;  %p788_p12 = scmp.lt.s32.totalorder %s786_s6, %s780_s30 }
 0x17a   : > { %p782_p9 = pnand %p781_p7, %p670_p3 }
 0x17b   : > { %p789_p13 = por %p788_p12, %p787_p11 }
 0x17c   : > { %p783_p10 = pneg %p782_p9 }
 0x17e   : > { %p790_p2 = pnand %p789_p13, %p783_p10 }
 0x180   : > { %793 = shalt.err (!%p790_p2)
}
 0x181   : > { %652 = dma.vmem_to_hbm [thread:$0]  (%p670_p3), %s481_s25, 16, %s1083_s4, [#allocation6]  }
 0x182   : > { %s804_s12 = scalar_lea.vmem %s492_s27, 16  ;;  %s810_s13 = scalar_lea.vmem %s492_s27, 32 }
 0x183   : > { %p805_p4 = scmp.ne.s32.totalorder %s492_s27, %s804_s12  ;;  %p811_p6 = scmp.lt.s32.totalorder %s492_s27, %s492_s27 }
 0x184   : > { %p812_p8 = scmp.lt.s32.totalorder %s810_s13, %s804_s12 }
 0x185   : > { %p806_p1 = pnand %p805_p4, %p670_p3 }
 0x186   : > { %p813_p0 = por %p812_p8, %p811_p6 }
 0x187   : > { %p807_p5 = pneg %p806_p1 }
 0x189   : > { %p814_p7 = pnand %p813_p0, %p807_p5 }
 0x18b   : > { %817 = shalt.err (!%p814_p7)
}
 0x18c   : > { %654 = dma.vmem_to_hbm [thread:$0]  (%p670_p3), %s492_s27, 16, %s1084_s5, [#allocation11]  }
 0x18d   : > { %853 = dma.done.wait (%p670_p3), [#allocation6], 16  }
 0x18e   : > { %855 = vsyncadd (%p670_p3), [#allocation6], 4294967280 }
 0x18f   : > { %857 = dma.done.wait (%p670_p3), [#allocation11], 16  }
 0x190   : > { %859 = vsyncadd (%p670_p3), [#allocation11], 4294967280 }
 0x191 PF: > { %p19_p9 = scmp.ge.s32.totalorder %s958_s28, 6   ;;  %s1097_s18 = smov %s866_s19 }
 0x192   : > { %s1098_s19 = smov %s870_s20  ;;  %s1099_s20 = smov %s978_s11 }
 0x193   : > { %s1100_s21 = smov %s958_s28  ;;  %21 = sbr.rel (!%p19_p9) target bundleno = 6 (0x6), region = 93 }
 0x198   :  { %508 = vsyncpa [#allocation5], 1 }
 0x199   :  { %510 = vsyncpa [#allocation5 + $0x1], 1 }
 0x19a   :  { %511 = vsyncpa [#allocation8], 1 }
 0x19b   :  { %512 = vsyncpa [#allocation6], 1 }
 0x19c   :  { %514 = vsyncpa [#allocation6 + $0x1], 1 }
 0x19d   :  { %515 = vsyncpa [#allocation11], 1 }

</bundles_post_ra>
